<compile_context>
chip_gen: v6e
topology: v6e:2x2x1
jax: 0.10.0
libtpu: 0.0.40
codegen_flags: <defaults>
</compile_context>

<pallas_src>
import functools

import jax
import jax.numpy as jnp
from jax.experimental import pallas as pl
from jax.experimental.pallas import tpu as pltpu


def _round_up(n, m):
    return (n + m - 1) // m * m


def _mlp_kernel(x_ref, w1_ref, b1_ref, w2_ref, b2_ref, w3_ref, b3_ref, o_ref):
    """One batch tile, all three layers fused.

    x_ref  : (T, D)    input dtype (f32), cast to compute dtype in-kernel
    w1_ref : (D, H1)   compute dtype      b1_ref: (1, H1) f32 (VMEM)
    w2_ref : (H1, H2)  compute dtype      b2_ref: (1, H2) f32 (VMEM)
    w3_ref : (1, H2)   compute dtype      b3_ref: (1,)    f32 (SMEM scalar)
    o_ref  : (1, 1, T) f32 -- batch along lanes => lane-dense stores.
    """
    cdt = w1_ref.dtype

    # Layer 1: MXU matmul, f32 accumulation; bias + ReLU in f32 on the VPU.
    h1 = jnp.dot(x_ref[...].astype(cdt), w1_ref[...],
                 preferred_element_type=jnp.float32)
    h1 = jnp.maximum(h1 + b1_ref[...], 0.0)             # Dropout(eval) = identity

    # Layer 2.
    h2 = jnp.dot(h1.astype(cdt), w2_ref[...],
                 preferred_element_type=jnp.float32)
    h2 = jnp.maximum(h2 + b2_ref[...], 0.0)              # Dropout(eval) = identity

    # Layer 3, computed transposed: (1, H2) . (T, H2)^T -> (1, T) so the output
    # tile is lane-dense (unmasked vst) instead of a masked (T, 1) column.
    y = jax.lax.dot_general(
        w3_ref[...], h2.astype(cdt),
        (((1,), (1,)), ((), ())),
        preferred_element_type=jnp.float32)
    y = y + b3_ref[0]
    o_ref[...] = y[None].astype(o_ref.dtype)              # (1, 1, T)


@functools.partial(jax.jit, static_argnames=("batch_tile", "compute_dtype"))
def sync_detector_mlp(x, w1, b1, w2, b2, w3, b3, *,
                      batch_tile=512, compute_dtype=jnp.bfloat16):
    """Fused SyncDetectorMLP forward (eval mode).

    x  : (B, D) f32
    w1 : (D, H1), w2 : (H1, H2)   -- torch weights pre-transposed to (in, out)
    w3 : (1, H2)                  -- torch layout of Linear(H2, 1).weight
    b1 : (H1,), b2 : (H2,), b3 : (1,)
    Returns (B,) f32, matching torch forward().
    """
    B, D = x.shape
    H1 = w1.shape[1]
    H2 = w2.shape[1]

    # Lane-dense batch tiles: multiples of 128, as large as batch_tile allows.
    tile = max(128, _round_up(min(batch_tile, B), 128))
    padded_B = _round_up(B, tile)
    num_tiles = padded_B // tile

    if padded_B != B:
        x = jnp.pad(x, ((0, padded_B - B), (0, 0)))

    # Weights go to the compute dtype once (tiny); biases stay f32 for the VPU
    # epilogue; x stays in its input dtype and is cast inside the kernel.
    w1c = w1.astype(compute_dtype)
    w2c = w2.astype(compute_dtype)
    w3c = w3.astype(compute_dtype)
    b1r = b1.reshape(1, H1).astype(jnp.float32)
    b2r = b2.reshape(1, H2).astype(jnp.float32)
    b3r = b3.reshape(1).astype(jnp.float32)

    out = pl.pallas_call(
        _mlp_kernel,
        out_shape=jax.ShapeDtypeStruct((num_tiles, 1, tile), jnp.float32),
        grid=(num_tiles,),
        in_specs=[
            pl.BlockSpec((tile, D), lambda i: (i, 0)),            # x tile (streamed)
            pl.BlockSpec((D, H1), lambda i: (0, 0)),              # W1 (resident)
            pl.BlockSpec((1, H1), lambda i: (0, 0)),              # b1
            pl.BlockSpec((H1, H2), lambda i: (0, 0)),             # W2
            pl.BlockSpec((1, H2), lambda i: (0, 0)),              # b2
            pl.BlockSpec((1, H2), lambda i: (0, 0)),              # W3 row
            pl.BlockSpec(memory_space=pltpu.MemorySpace.SMEM),    # b3 scalar
        ],
        out_specs=pl.BlockSpec((1, 1, tile), lambda i: (i, 0, 0)),
        compiler_params=pltpu.CompilerParams(
            dimension_semantics=("parallel",)),
    )(x, w1c, b1r, w2c, b2r, w3c, b3r)

    # (num_tiles, 1, tile) rows are contiguous batch chunks -> flatten, drop padding.
    return out.reshape(padded_B)[:B]


def _init_linear(key, fan_in, fan_out):
    # torch default Linear init (uniform +-1/sqrt(fan_in)), stored as (in, out).
    kw, kb = jax.random.split(key)
    bound = 1.0 / float(fan_in) ** 0.5
    w = jax.random.uniform(kw, (fan_in, fan_out), jnp.float32, -bound, bound)
    b = jax.random.uniform(kb, (fan_out,), jnp.float32, -bound, bound)
    return w, b


def _reference(x, w1, b1, w2, b2, w3, b3, dtype=jnp.float32):
    """Pure-JAX reference with the same operand dtype / f32-accumulation scheme."""
    f32 = jnp.float32
    xd, w1d, w2d, w3d = (a.astype(dtype) for a in (x, w1, w2, w3))
    h1 = jnp.maximum(jnp.dot(xd, w1d, preferred_element_type=f32) + b1, 0.0)
    h2 = jnp.maximum(jnp.dot(h1.astype(dtype), w2d, preferred_element_type=f32) + b2, 0.0)
    return jnp.dot(h2.astype(dtype), w3d[0], preferred_element_type=f32) + b3[0]


if __name__ == "__main__":
    key = jax.random.PRNGKey(0)
    k_x, k1, k2, k3 = jax.random.split(key, 4)

    B, INPUT_DIM = 64, 32            # small; deliberately not a multiple of the tile
    H1, H2 = 256, 128

    x = jax.random.normal(k_x, (B, INPUT_DIM), jnp.float32)
    w1, b1 = _init_linear(k1, INPUT_DIM, H1)
    w2, b2 = _init_linear(k2, H1, H2)
    kw3, kb3 = jax.random.split(k3)
    bound3 = 1.0 / float(H2) ** 0.5
    w3 = jax.random.uniform(kw3, (1, H2), jnp.float32, -bound3, bound3)   # torch (out, in)
    b3 = jax.random.uniform(kb3, (1,), jnp.float32, -bound3, bound3)

    # f32 path: matches the f32 reference tightly.
    y32 = sync_detector_mlp(x, w1, b1, w2, b2, w3, b3, compute_dtype=jnp.float32)
    jax.block_until_ready(y32)
    ref32 = _reference(x, w1, b1, w2, b2, w3, b3, dtype=jnp.float32)
    assert y32.shape == (B,)
    assert jnp.allclose(y32, ref32, atol=1e-5, rtol=1e-5), float(jnp.max(jnp.abs(y32 - ref32)))

    # Default bf16-operand / f32-accumulate path (MXU-friendly on v5e/v6e/v7x).
    ybf = sync_detector_mlp(x, w1, b1, w2, b2, w3, b3)
    jax.block_until_ready(ybf)
    refbf = _reference(x, w1, b1, w2, b2, w3, b3, dtype=jnp.bfloat16)
    assert ybf.shape == (B,)
    assert jnp.allclose(ybf, refbf, atol=1e-2, rtol=1e-2), float(jnp.max(jnp.abs(ybf - refbf)))

    print("KERNEL_OK")
</pallas_src>

<mosaic_0001>
module attributes {stable_mosaic.version = 11 : i64} {
  func.func @_mlp_kernel(%arg0: i32, %arg1: memref<128x32xf32, #tpu.memory_space<vmem>>, %arg2: memref<32x256xf32, #tpu.memory_space<vmem>>, %arg3: memref<1x256xf32, #tpu.memory_space<vmem>>, %arg4: memref<256x128xf32, #tpu.memory_space<vmem>>, %arg5: memref<1x128xf32, #tpu.memory_space<vmem>>, %arg6: memref<1x128xf32, #tpu.memory_space<vmem>>, %arg7: memref<1xf32, #tpu.memory_space<smem>>, %arg8: memref<1x1x128xf32, #tpu.memory_space<vmem>>) attributes {dimension_semantics = [#tpu.dimension_semantics<parallel>], iteration_bounds = array<i64: 1>, scalar_prefetch = 0 : i64, scratch_operands = 0 : i64, tpu.core_type = #tpu.core_type<tc>, window_params = [{transform_indices = @transform_0, window_bounds = array<i64: 128, 32>}, {pipeline_mode = #tpu.pipeline_mode<synchronous>, transform_indices = @transform_1, window_bounds = array<i64: 32, 256>}, {pipeline_mode = #tpu.pipeline_mode<synchronous>, transform_indices = @transform_2, window_bounds = array<i64: 1, 256>}, {pipeline_mode = #tpu.pipeline_mode<synchronous>, transform_indices = @transform_3, window_bounds = array<i64: 256, 128>}, {pipeline_mode = #tpu.pipeline_mode<synchronous>, transform_indices = @transform_4, window_bounds = array<i64: 1, 128>}, {pipeline_mode = #tpu.pipeline_mode<synchronous>, transform_indices = @transform_5, window_bounds = array<i64: 1, 128>}, {transform_indices = @transform_6, window_bounds = array<i64: 1>}, {transform_indices = @transform_7, window_bounds = array<i64: 1, 1, 128>}]} {
    %c0 = arith.constant 0 : index
    %c0_0 = arith.constant 0 : index
    %0 = vector.load %arg1[%c0, %c0_0] : memref<128x32xf32, #tpu.memory_space<vmem>>, vector<128x32xf32>
    %c0_1 = arith.constant 0 : index
    %c0_2 = arith.constant 0 : index
    %1 = vector.load %arg2[%c0_1, %c0_2] : memref<32x256xf32, #tpu.memory_space<vmem>>, vector<32x256xf32>
    %cst = arith.constant dense<0.000000e+00> : vector<128x256xf32>
    %2 = tpu.matmul %0, %1, %cst {dimension_numbers = #tpu.dot_dimension_numbers<[1], [0], [0], [1], [0, 0, 1, 1], [], []>} : vector<128x32xf32>, vector<32x256xf32>, vector<128x256xf32> -> vector<128x256xf32>
    %c0_3 = arith.constant 0 : index
    %c0_4 = arith.constant 0 : index
    %3 = vector.load %arg3[%c0_3, %c0_4] : memref<1x256xf32, #tpu.memory_space<vmem>>, vector<1x256xf32>
    %4 = vector.broadcast %3 : vector<1x256xf32> to vector<128x256xf32>
    %5 = arith.addf %2, %4 : vector<128x256xf32>
    %cst_5 = arith.constant 0.000000e+00 : f32
    %6 = vector.broadcast %cst_5 : f32 to vector<128x256xf32>
    %7 = arith.maximumf %5, %6 : vector<128x256xf32>
    %c0_6 = arith.constant 0 : index
    %c0_7 = arith.constant 0 : index
    %8 = vector.load %arg4[%c0_6, %c0_7] : memref<256x128xf32, #tpu.memory_space<vmem>>, vector<256x128xf32>
    %cst_8 = arith.constant dense<0.000000e+00> : vector<128x128xf32>
    %9 = tpu.matmul %7, %8, %cst_8 {dimension_numbers = #tpu.dot_dimension_numbers<[1], [0], [0], [1], [0, 0, 1, 1], [], []>} : vector<128x256xf32>, vector<256x128xf32>, vector<128x128xf32> -> vector<128x128xf32>
    %c0_9 = arith.constant 0 : index
    %c0_10 = arith.constant 0 : index
    %10 = vector.load %arg5[%c0_9, %c0_10] : memref<1x128xf32, #tpu.memory_space<vmem>>, vector<1x128xf32>
    %11 = vector.broadcast %10 : vector<1x128xf32> to vector<128x128xf32>
    %12 = arith.addf %9, %11 : vector<128x128xf32>
    %cst_11 = arith.constant 0.000000e+00 : f32
    %13 = vector.broadcast %cst_11 : f32 to vector<128x128xf32>
    %14 = arith.maximumf %12, %13 : vector<128x128xf32>
    %c0_12 = arith.constant 0 : index
    %c0_13 = arith.constant 0 : index
    %15 = vector.load %arg6[%c0_12, %c0_13] : memref<1x128xf32, #tpu.memory_space<vmem>>, vector<1x128xf32>
    %cst_14 = arith.constant dense<0.000000e+00> : vector<1x128xf32>
    %16 = tpu.matmul %15, %14, %cst_14 {dimension_numbers = #tpu.dot_dimension_numbers<[1], [1], [0], [0], [0, 0, 1, 0], [], []>} : vector<1x128xf32>, vector<128x128xf32>, vector<1x128xf32> -> vector<1x128xf32>
    %c0_15 = arith.constant 0 : index
    %17 = memref.load %arg7[%c0_15] : memref<1xf32, #tpu.memory_space<smem>>
    %18 = vector.broadcast %17 : f32 to vector<1x128xf32>
    %19 = arith.addf %16, %18 : vector<1x128xf32>
    %20 = vector.shape_cast %19 : vector<1x128xf32> to vector<1x1x128xf32>
    %c0_16 = arith.constant 0 : index
    %c0_17 = arith.constant 0 : index
    %c0_18 = arith.constant 0 : index
    %21 = vector.load %arg8[%c0_16, %c0_17, %c0_18] : memref<1x1x128xf32, #tpu.memory_space<vmem>>, vector<1x1x128xf32>
    tpu.vector_store %arg8[%c0_16, %c0_17, %c0_18], %20 {strides = array<i32>} : memref<1x1x128xf32, #tpu.memory_space<vmem>>, vector<1x1x128xf32>,
    return
  }
  func.func @transform_0(%arg0: i32) -> (i32, i32) {
    %c0_i32 = arith.constant 0 : i32
    %c0_i32_0 = arith.constant 0 : i32
    return %arg0, %c0_i32 : i32, i32
  }
  func.func @transform_1(%arg0: i32) -> (i32, i32) {
    %c0_i32 = arith.constant 0 : i32
    %c0_i32_0 = arith.constant 0 : i32
    %c0_i32_1 = arith.constant 0 : i32
    return %c0_i32, %c0_i32_0 : i32, i32
  }
  func.func @transform_2(%arg0: i32) -> (i32, i32) {
    %c0_i32 = arith.constant 0 : i32
    %c0_i32_0 = arith.constant 0 : i32
    %c0_i32_1 = arith.constant 0 : i32
    return %c0_i32, %c0_i32_0 : i32, i32
  }
  func.func @transform_3(%arg0: i32) -> (i32, i32) {
    %c0_i32 = arith.constant 0 : i32
    %c0_i32_0 = arith.constant 0 : i32
    %c0_i32_1 = arith.constant 0 : i32
    return %c0_i32, %c0_i32_0 : i32, i32
  }
  func.func @transform_4(%arg0: i32) -> (i32, i32) {
    %c0_i32 = arith.constant 0 : i32
    %c0_i32_0 = arith.constant 0 : i32
    %c0_i32_1 = arith.constant 0 : i32
    return %c0_i32, %c0_i32_0 : i32, i32
  }
  func.func @transform_5(%arg0: i32) -> (i32, i32) {
    %c0_i32 = arith.constant 0 : i32
    %c0_i32_0 = arith.constant 0 : i32
    %c0_i32_1 = arith.constant 0 : i32
    return %c0_i32, %c0_i32_0 : i32, i32
  }
  func.func @transform_6(%arg0: i32) -> i32 {
    %c0_i32 = arith.constant 0 : i32
    %c0_i32_0 = arith.constant 0 : i32
    return %c0_i32 : i32
  }
  func.func @transform_7(%arg0: i32) -> (i32, i32, i32) {
    %c0_i32 = arith.constant 0 : i32
    %c0_i32_0 = arith.constant 0 : i32
    %c0_i32_1 = arith.constant 0 : i32
    return %arg0, %c0_i32, %c0_i32_0 : i32, i32, i32
  }
}

</mosaic_0001>

<bundles_post_ra>
// kernel: sync_detector_mlp.1
= control target key start
LH: loop header
LB: loop body
LE: loop exit
PB: predicated region body
PF: predicated region fallthrough
CT: control target
= control target key end

     0   :  { %13 = vsyncpa [#allocation4], 0  ;;  %s774_s24 = smov [#allocation3]   ;;  %s1102_s0 = inlined_call_operand.vmem [shape: f32[128,32], index: 0, kind: input, shape index: {}]   ;;  %s1103_s1 = inlined_call_operand.hbm [shape: f32[32,256], index: 1, kind: input, shape index: {}]   ;;  %s1104_s2 = inlined_call_operand.vmem [shape: f32[1,256], index: 2, kind: input, shape index: {}]   ;;  %s1105_s3 = inlined_call_operand.vmem [shape: f32[256,128], index: 3, kind: input, shape index: {}]   ;;  %s1106_s4 = inlined_call_operand.vmem [shape: f32[1,128], index: 4, kind: input, shape index: {}]   ;;  %s1107_s5 = inlined_call_operand.vmem [shape: f32[1,128], index: 5, kind: input, shape index: {}]   ;;  %s1108_s6 = inlined_call_operand.<no memory space> [shape: f32[1], index: 6, kind: input, shape index: {}]   ;;  %s1109_s7 = inlined_call_operand.vmem [shape: f32[1,1,128], index: 7, kind: output, shape index: {}]  }
   0x1   :  { %s21_s25 = sshll.u32 %s774_s24, 4  ;;  %s22_s25 = int_to_ptr.vmem [resolvable:$true] %s21_s25 }
   0x2   :  { %s760_s26 = scalar_lea.vmem %s22_s25, 1024  ;;  %p765_p1 = scmp.lt.s32.totalorder %s22_s25, %s22_s25 }
   0x3   :  { %p761_p0 = scmp.ne.s32.totalorder %s22_s25, %s760_s26  ;;  %p766_p2 = scmp.lt.s32.totalorder %s760_s26, %s760_s26 }
   0x5   :  { %p767_p3 = por %p766_p2, %p765_p1 }
   0x7   :  { %p768_p4 = pnand %p767_p3, %p761_p0 }
   0x9   :  { %771 = shalt.err (!%p768_p4)
}
   0xa   :  { %s775_s27 = smov 256   ;;  %s776_s28 = smov 16  }
   0xb   :  { %27 = dma.hbm_to_vmem [thread:$0]  %s1103_s1, 1024, %s22_s25, [#allocation4], %s775_s27, %s775_s27, %s776_s28  }
   0xc   :  { %772 = dma.done.wait [#allocation4], 1024  }
   0xd   :  { %773 = vsyncadd [#allocation4], 4294966272  ;;  %v777_v0 = vmov 0.0   ;;  %v64_v1 = vld [vmem:[#allocation3 + $0x38] sm:$0xff]  ;;  %v63_v2 = vld [vmem:[#allocation3 + $0x30] sm:$0xff]  ;;  %vm77_vm0 = vcmask 261120   ;;  %v67_v57 = vlaneseq }
   0xe   :  { %190 = vmatprep.mubr.f32.mxu0 %v777_v0  ;;  %v62_v3 = vld [vmem:[#allocation3 + $0x28] sm:$0xff]  ;;  %150 = vmatprep.subr.mxu0 %v64_v1  ;;  %v61_v4 = vld [vmem:[#allocation3 + $0x20] sm:$0xff]  ;;  %v60_v5 = vld [vmem:[#allocation3 + $0x18] sm:$0xff]  ;;  %vm778_vm1 = vmmov 0  }
   0xf   :  { %151 = vmatpush1.msra.mxu0 %v63_v2  ;;  %v59_v6 = vld [vmem:[#allocation3 + $0x10] sm:$0xff]  ;;  %v58_v7 = vld [vmem:[#allocation3 + $0x8] sm:$0xff]  ;;  %v57_v8 = vld [vmem:[#allocation3] sm:$0xff]  ;;  %v68_v58 = vshrl.u32 %v67_v57, 7 }
  0x10   :  { %152 = vmatprep.subr.mxu0 %v62_v3  ;;  %v41_v9 = vld [vmem:[%s1102_s0] sm:$0xff]  ;;  %v350_v10 = vld [vmem:[%s1105_s3 + $0xf8] sm:$0xff]  ;;  %v349_v12 = vld [vmem:[%s1105_s3 + $0xf0] sm:$0xff] }
  0x11   :  { %153 = vmatpush1.msra.mxu0 %v61_v4  ;;  %v334_v11 = vld [vmem:[%s1105_s3 + $0x78] sm:$0xff]  ;;  %615 = vmatprep.subr.mxu1 %v350_v10  ;;  %v333_v13 = vld [vmem:[%s1105_s3 + $0x70] sm:$0xff]  ;;  %v42_v14 = vld [vmem:[%s1102_s0 + $0x8] sm:$0xff]  ;;  %v69_v59 = vsub.s32 0, %v68_v58  ;;  %v73_v61 = vsub.s32 1, %v68_v58 }
  0x12   :  { %154 = vmatprep.subr.mxu0 %v60_v5  ;;  %616 = vmatpush3.msra.mxu1 %v334_v11  ;;  %v348_v15 = vld [vmem:[%s1105_s3 + $0xe8] sm:$0xff]  ;;  %v347_v17 = vld [vmem:[%s1105_s3 + $0xe0] sm:$0xff]  ;;  %v43_v19 = vld [vmem:[%s1102_s0 + $0x10] sm:$0xff] }
  0x13   :  { %155 = vmatpush1.msra.mxu0 %v59_v6  ;;  %617 = vmatprep.subr.mxu1 %v349_v12  ;;  %v332_v16 = vld [vmem:[%s1105_s3 + $0x68] sm:$0xff]  ;;  %v331_v18 = vld [vmem:[%s1105_s3 + $0x60] sm:$0xff]  ;;  %v346_v20 = vld [vmem:[%s1105_s3 + $0xd8] sm:$0xff] }
  0x14   :  { %156 = vmatprep.subr.mxu0 %v58_v7  ;;  %618 = vmatpush3.msra.mxu1 %v333_v13  ;;  %v330_v21 = vld [vmem:[%s1105_s3 + $0x58] sm:$0xff]  ;;  %v345_v22 = vld [vmem:[%s1105_s3 + $0xd0] sm:$0xff]  ;;  %v344_v25 = vld [vmem:[%s1105_s3 + $0xc8] sm:$0xff] }
  0x15   :  { %157 = vmatpush1.msra.mxu0 %v57_v8  ;;  %619 = vmatprep.subr.mxu1 %v348_v15  ;;  %v329_v23 = vld [vmem:[%s1105_s3 + $0x50] sm:$0xff]  ;;  %v44_v24 = vld [vmem:[%s1102_s0 + $0x18] sm:$0xff]  ;;  %v328_v26 = vld [vmem:[%s1105_s3 + $0x48] sm:$0xff] }
  0x16   :  { %598 = vmatmul.mubr.msk.f32.vlgmr.msra.gmra.mxu0 %vm77_vm0, %v41_v9  ;;  %712 = vmatprep.subr.mxu0 %v777_v0  ;;  %v343_v27 = vld [vmem:[%s1105_s3 + $0xc0] sm:$0xff]  ;;  %v342_v30 = vld [vmem:[%s1105_s3 + $0xb8] sm:$0xff]  ;;  %v341_v32 = vld [vmem:[%s1105_s3 + $0xb0] sm:$0xff] }
  0x17   :  { %196 = vmatprep.mubr.f32.mxu0 %v777_v0  ;;  %620 = vmatpush3.msra.mxu1 %v332_v16  ;;  %v327_v28 = vld [vmem:[%s1105_s3 + $0x40] sm:$0xff]  ;;  %v326_v31 = vld [vmem:[%s1105_s3 + $0x38] sm:$0xff]  ;;  %v325_v33 = vld [vmem:[%s1105_s3 + $0x30] sm:$0xff] }
  0x18   :  { %621 = vmatprep.subr.mxu1 %v347_v17  ;;  %v45_v29 = vld [vmem:[%s1102_s0 + $0x20] sm:$0xff]  ;;  %v46_v34 = vld [vmem:[%s1102_s0 + $0x28] sm:$0xff]  ;;  %v47_v39 = vld [vmem:[%s1102_s0 + $0x30] sm:$0xff] }
  0x19   :  { %622 = vmatpush3.msra.mxu1 %v331_v18  ;;  %v340_v35 = vld [vmem:[%s1105_s3 + $0xa8] sm:$0xff]  ;;  %v339_v37 = vld [vmem:[%s1105_s3 + $0xa0] sm:$0xff]  ;;  %v48_v40 = vld [vmem:[%s1102_s0 + $0x38] sm:$0xff] }
  0x1a   :  { %599 = vmatmul.mubr.msk.f32.gmra.mxu0 %vm77_vm0, %v42_v14  ;;  %623 = vmatprep.subr.mxu1 %v346_v20  ;;  %v324_v36 = vld [vmem:[%s1105_s3 + $0x28] sm:$0xff]  ;;  %v323_v38 = vld [vmem:[%s1105_s3 + $0x20] sm:$0xff]  ;;  %v51_v43 = vld [vmem:[%s1102_s0 + $0x50] sm:$0xff] }
  0x1b   :  { %202 = vmatprep.mubr.f32.mxu0 %v777_v0  ;;  %624 = vmatpush3.msra.mxu1 %v330_v21  ;;  %v49_v41 = vld [vmem:[%s1102_s0 + $0x40] sm:$0xff]  ;;  %v50_v42 = vld [vmem:[%s1102_s0 + $0x48] sm:$0xff]  ;;  %v52_v44 = vld [vmem:[%s1102_s0 + $0x58] sm:$0xff] }
  0x1c   :  { %625 = vmatprep.subr.mxu1 %v345_v22  ;;  %v53_v45 = vld [vmem:[%s1102_s0 + $0x60] sm:$0xff]  ;;  %v54_v46 = vld [vmem:[%s1102_s0 + $0x68] sm:$0xff]  ;;  %v55_v47 = vld [vmem:[%s1102_s0 + $0x70] sm:$0xff] }
  0x1d   :  { %626 = vmatpush3.msra.mxu1 %v329_v23  ;;  %v56_v48 = vld [vmem:[%s1102_s0 + $0x78] sm:$0xff]  ;;  %v337_v51 = vld [vmem:[%s1105_s3 + $0x90] sm:$0xff]  ;;  %v336_v53 = vld [vmem:[%s1105_s3 + $0x88] sm:$0xff] }
  0x1e   :  { %600 = vmatmul.mubr.msk.f32.gmra.mxu0 %vm77_vm0, %v43_v19  ;;  %627 = vmatprep.subr.mxu1 %v344_v25  ;;  %v338_v49 = vld [vmem:[%s1105_s3 + $0x98] sm:$0xff]  ;;  %v321_v52 = vld [vmem:[%s1105_s3 + $0x10] sm:$0xff]  ;;  %v320_v54 = vld [vmem:[%s1105_s3 + $0x8] sm:$0xff] }
  0x1f   :  { %208 = vmatprep.mubr.f32.mxu0 %v777_v0  ;;  %628 = vmatpush3.msra.mxu1 %v328_v26  ;;  %v322_v50 = vld [vmem:[%s1105_s3 + $0x18] sm:$0xff]  ;;  %v335_v55 = vld [vmem:[%s1105_s3 + $0x80] sm:$0xff] }
  0x20   :  { %629 = vmatprep.subr.mxu1 %v343_v27  ;;  %v319_v56 = vld [vmem:[%s1105_s3] sm:$0xff] }
  0x21   :  { %630 = vmatpush3.msra.mxu1 %v327_v28  ;;  %v65_v60 = vld [vmem:[%s1104_s2] sm:$0x3] }
  0x22   :  { %601 = vmatmul.mubr.msk.f32.gmra.mxu0 %vm77_vm0, %v44_v24  ;;  %631 = vmatprep.subr.mxu1 %v342_v30  ;;  %v1002_v62 = vrot.slane %v65_v60, %v69_v59  ;;  %v1004_v63 = vrot.slane %v65_v60, %v73_v61 }
  0x23   :  { %214 = vmatprep.mubr.f32.mxu0 %v777_v0  ;;  %632 = vmatpush3.msra.mxu1 %v326_v31 }
  0x24   :  { %633 = vmatprep.subr.mxu1 %v341_v32 }
  0x25   :  { %634 = vmatpush3.msra.mxu1 %v325_v33 }
  0x26   :  { %602 = vmatmul.mubr.msk.f32.gmra.mxu0 %vm77_vm0, %v45_v29  ;;  %635 = vmatprep.subr.mxu1 %v340_v35 }
  0x27   :  { %220 = vmatprep.mubr.f32.mxu0 %v777_v0  ;;  %636 = vmatpush3.msra.mxu1 %v324_v36 }
  0x28   :  { %637 = vmatprep.subr.mxu1 %v339_v37 }
  0x29   :  { %638 = vmatpush3.msra.mxu1 %v323_v38 }
  0x2a   :  { %603 = vmatmul.mubr.msk.f32.gmra.mxu0 %vm77_vm0, %v46_v34  ;;  %639 = vmatprep.subr.mxu1 %v338_v49 }
  0x2b   :  { %226 = vmatprep.mubr.f32.mxu0 %v777_v0  ;;  %640 = vmatpush3.msra.mxu1 %v322_v50 }
  0x2c   :  { %641 = vmatprep.subr.mxu1 %v337_v51 }
  0x2d   :  { %642 = vmatpush3.msra.mxu1 %v321_v52 }
  0x2e   :  { %604 = vmatmul.mubr.msk.f32.gmra.mxu0 %vm77_vm0, %v47_v39  ;;  %643 = vmatprep.subr.mxu1 %v336_v53 }
  0x2f   :  { %232 = vmatprep.mubr.f32.mxu0 %v777_v0  ;;  %644 = vmatpush3.msra.mxu1 %v320_v54 }
  0x30   :  { %645 = vmatprep.subr.mxu1 %v335_v55 }
  0x31   :  { %646 = vmatpush3.msra.mxu1 %v319_v56 }
  0x32   :  { %605 = vmatmul.mubr.msk.f32.gmra.mxu0 %vm77_vm0, %v48_v40 }
  0x33   :  { %238 = vmatprep.mubr.f32.mxu0 %v777_v0 }
  0x36   :  { %606 = vmatmul.mubr.msk.f32.gmra.mxu0 %vm77_vm0, %v49_v41 }
  0x37   :  { %244 = vmatprep.mubr.f32.mxu0 %v777_v0 }
  0x3a   :  { %607 = vmatmul.mubr.msk.f32.gmra.mxu0 %vm77_vm0, %v50_v42 }
  0x3b   :  { %250 = vmatprep.mubr.f32.mxu0 %v777_v0 }
  0x3e   :  { %608 = vmatmul.mubr.msk.f32.gmra.mxu0 %vm77_vm0, %v51_v43 }
  0x3f   :  { %256 = vmatprep.mubr.f32.mxu0 %v777_v0 }
  0x42   :  { %609 = vmatmul.mubr.msk.f32.gmra.mxu0 %vm77_vm0, %v52_v44 }
  0x43   :  { %262 = vmatprep.mubr.f32.mxu0 %v777_v0 }
  0x46   :  { %610 = vmatmul.mubr.msk.f32.gmra.mxu0 %vm77_vm0, %v53_v45 }
  0x47   :  { %268 = vmatprep.mubr.f32.mxu0 %v777_v0 }
  0x4a   :  { %611 = vmatmul.mubr.msk.f32.gmra.mxu0 %vm77_vm0, %v54_v46 }
  0x4b   :  { %274 = vmatprep.mubr.f32.mxu0 %v777_v0 }
  0x4e   :  { %612 = vmatmul.mubr.msk.f32.gmra.mxu0 %vm77_vm0, %v55_v47 }
  0x4f   :  { %280 = vmatprep.mubr.f32.mxu0 %v777_v0 }
  0x52   :  { %613 = vmatmul.mubr.msk.f32.gmra.mxu0 %vm77_vm0, %v56_v48 }
  0x53   :  { %744 = vmatprep.mubr.msk.f32.mxu0 %vm778_vm1, %v777_v0 }
  0xd6   :  { %v192_v1 = vpop.f32.mrf.mxu0 }
  0xd7   :  { %v193_v2 = vadd.f32 %v192_v1, %v1002_v62 }
  0xd8   :  { %v194_v3 = vpop.f32.mrf.mxu0 }
  0xd9   :  { %v195_v4 = vadd.f32 %v194_v3, %v1004_v63  ;;  %v287_v7 = vmax.f32 %v193_v2, 0.0 }
  0xda   :  { %v198_v5 = vpop.f32.mrf.mxu0 }
  0xdb   :  { %v288_v6 = vmax.f32 %v195_v4, 0.0  ;;  %v199_v8 = vadd.f32 %v198_v5, %v1002_v62 }
  0xdc   :  { %v200_v9 = vpop.f32.mrf.mxu0 }
  0xdd   :  { %v201_v10 = vadd.f32 %v200_v9, %v1004_v63  ;;  %422 = vmatprep.mubr.f32.mxu1 %v288_v6  ;;  %v289_v13 = vmax.f32 %v199_v8, 0.0 }
  0xde   :  { %v204_v11 = vpop.f32.mrf.mxu0  ;;  %423 = vmatmul.mubr.f32.vlgmr.msra.gmra.mxu1 %v287_v7 }
  0xdf   :  { %v290_v12 = vmax.f32 %v201_v10, 0.0  ;;  %v205_v14 = vadd.f32 %v204_v11, %v1002_v62 }
  0xe0   :  { %v206_v15 = vpop.f32.mrf.mxu0 }
  0xe1   :  { %v207_v16 = vadd.f32 %v206_v15, %v1004_v63  ;;  %427 = vmatprep.mubr.f32.mxu1 %v290_v12  ;;  %v291_v19 = vmax.f32 %v205_v14, 0.0 }
  0xe2   :  { %v210_v17 = vpop.f32.mrf.mxu0  ;;  %428 = vmatmul.mubr.f32.gmra.mxu1 %v289_v13 }
  0xe3   :  { %v292_v18 = vmax.f32 %v207_v16, 0.0  ;;  %v211_v20 = vadd.f32 %v210_v17, %v1002_v62 }
  0xe4   :  { %v212_v21 = vpop.f32.mrf.mxu0 }
  0xe5   :  { %v213_v22 = vadd.f32 %v212_v21, %v1004_v63  ;;  %432 = vmatprep.mubr.f32.mxu1 %v292_v18  ;;  %v293_v25 = vmax.f32 %v211_v20, 0.0 }
  0xe6   :  { %v216_v23 = vpop.f32.mrf.mxu0  ;;  %433 = vmatmul.mubr.f32.gmra.mxu1 %v291_v19 }
  0xe7   :  { %v294_v24 = vmax.f32 %v213_v22, 0.0  ;;  %v217_v26 = vadd.f32 %v216_v23, %v1002_v62 }
  0xe8   :  { %v218_v27 = vpop.f32.mrf.mxu0 }
  0xe9   :  { %v219_v28 = vadd.f32 %v218_v27, %v1004_v63  ;;  %437 = vmatprep.mubr.f32.mxu1 %v294_v24  ;;  %v295_v31 = vmax.f32 %v217_v26, 0.0 }
  0xea   :  { %v222_v29 = vpop.f32.mrf.mxu0  ;;  %438 = vmatmul.mubr.f32.gmra.mxu1 %v293_v25 }
  0xeb   :  { %v296_v30 = vmax.f32 %v219_v28, 0.0  ;;  %v223_v32 = vadd.f32 %v222_v29, %v1002_v62 }
  0xec   :  { %v224_v33 = vpop.f32.mrf.mxu0 }
  0xed   :  { %v225_v34 = vadd.f32 %v224_v33, %v1004_v63  ;;  %442 = vmatprep.mubr.f32.mxu1 %v296_v30  ;;  %v297_v37 = vmax.f32 %v223_v32, 0.0 }
  0xee   :  { %v228_v35 = vpop.f32.mrf.mxu0  ;;  %443 = vmatmul.mubr.f32.gmra.mxu1 %v295_v31 }
  0xef   :  { %v298_v36 = vmax.f32 %v225_v34, 0.0  ;;  %v229_v38 = vadd.f32 %v228_v35, %v1002_v62 }
  0xf0   :  { %v230_v39 = vpop.f32.mrf.mxu0 }
  0xf1   :  { %v231_v40 = vadd.f32 %v230_v39, %v1004_v63  ;;  %447 = vmatprep.mubr.f32.mxu1 %v298_v36  ;;  %v299_v43 = vmax.f32 %v229_v38, 0.0 }
  0xf2   :  { %v234_v41 = vpop.f32.mrf.mxu0  ;;  %448 = vmatmul.mubr.f32.gmra.mxu1 %v297_v37 }
  0xf3   :  { %v300_v42 = vmax.f32 %v231_v40, 0.0  ;;  %v235_v44 = vadd.f32 %v234_v41, %v1002_v62 }
  0xf4   :  { %v236_v45 = vpop.f32.mrf.mxu0 }
  0xf5   :  { %v237_v46 = vadd.f32 %v236_v45, %v1004_v63  ;;  %452 = vmatprep.mubr.f32.mxu1 %v300_v42  ;;  %v301_v49 = vmax.f32 %v235_v44, 0.0 }
  0xf6   :  { %v240_v47 = vpop.f32.mrf.mxu0  ;;  %453 = vmatmul.mubr.f32.gmra.mxu1 %v299_v43 }
  0xf7   :  { %v302_v48 = vmax.f32 %v237_v46, 0.0  ;;  %v241_v50 = vadd.f32 %v240_v47, %v1002_v62 }
  0xf8   :  { %v242_v51 = vpop.f32.mrf.mxu0 }
  0xf9   :  { %v243_v52 = vadd.f32 %v242_v51, %v1004_v63  ;;  %457 = vmatprep.mubr.f32.mxu1 %v302_v48  ;;  %v303_v55 = vmax.f32 %v241_v50, 0.0 }
  0xfa   :  { %v246_v53 = vpop.f32.mrf.mxu0  ;;  %458 = vmatmul.mubr.f32.gmra.mxu1 %v301_v49 }
  0xfb   :  { %v304_v54 = vmax.f32 %v243_v52, 0.0  ;;  %v247_v56 = vadd.f32 %v246_v53, %v1002_v62 }
  0xfc   :  { %v248_v57 = vpop.f32.mrf.mxu0 }
  0xfd   :  { %v249_v58 = vadd.f32 %v248_v57, %v1004_v63  ;;  %462 = vmatprep.mubr.f32.mxu1 %v304_v54  ;;  %v305_v61 = vmax.f32 %v247_v56, 0.0 }
  0xfe   :  { %v252_v59 = vpop.f32.mrf.mxu0  ;;  %463 = vmatmul.mubr.f32.gmra.mxu1 %v303_v55 }
  0xff   :  { %v306_v60 = vmax.f32 %v249_v58, 0.0  ;;  %v253_v1 = vadd.f32 %v252_v59, %v1002_v62 }
 0x100   :  { %v254_v2 = vpop.f32.mrf.mxu0 }
 0x101   :  { %v255_v3 = vadd.f32 %v254_v2, %v1004_v63  ;;  %467 = vmatprep.mubr.f32.mxu1 %v306_v60  ;;  %v307_v6 = vmax.f32 %v253_v1, 0.0 }
 0x102   :  { %v258_v4 = vpop.f32.mrf.mxu0  ;;  %468 = vmatmul.mubr.f32.gmra.mxu1 %v305_v61 }
 0x103   :  { %v308_v5 = vmax.f32 %v255_v3, 0.0  ;;  %v259_v7 = vadd.f32 %v258_v4, %v1002_v62 }
 0x104   :  { %v260_v8 = vpop.f32.mrf.mxu0 }
 0x105   :  { %v261_v9 = vadd.f32 %v260_v8, %v1004_v63  ;;  %472 = vmatprep.mubr.f32.mxu1 %v308_v5  ;;  %v309_v12 = vmax.f32 %v259_v7, 0.0 }
 0x106   :  { %v264_v10 = vpop.f32.mrf.mxu0  ;;  %473 = vmatmul.mubr.f32.gmra.mxu1 %v307_v6 }
 0x107   :  { %v310_v11 = vmax.f32 %v261_v9, 0.0  ;;  %v265_v13 = vadd.f32 %v264_v10, %v1002_v62 }
 0x108   :  { %v266_v14 = vpop.f32.mrf.mxu0 }
 0x109   :  { %v267_v15 = vadd.f32 %v266_v14, %v1004_v63  ;;  %477 = vmatprep.mubr.f32.mxu1 %v310_v11  ;;  %v311_v18 = vmax.f32 %v265_v13, 0.0 }
 0x10a   :  { %v270_v16 = vpop.f32.mrf.mxu0  ;;  %478 = vmatmul.mubr.f32.gmra.mxu1 %v309_v12 }
 0x10b   :  { %v312_v17 = vmax.f32 %v267_v15, 0.0  ;;  %v271_v19 = vadd.f32 %v270_v16, %v1002_v62  ;;  %v1054_v15 = vld [vmem:[%s1106_s4] ss:$0 sm:$0xff] }
 0x10c   :  { %v272_v20 = vpop.f32.mrf.mxu0 }
 0x10d   :  { %v273_v21 = vadd.f32 %v272_v20, %v1004_v63  ;;  %482 = vmatprep.mubr.f32.mxu1 %v312_v17  ;;  %v313_v24 = vmax.f32 %v271_v19, 0.0 }
 0x10e   :  { %v276_v22 = vpop.f32.mrf.mxu0  ;;  %483 = vmatmul.mubr.f32.gmra.mxu1 %v311_v18 }
 0x10f   :  { %v314_v23 = vmax.f32 %v273_v21, 0.0  ;;  %v277_v25 = vadd.f32 %v276_v22, %v1002_v62 }
 0x110   :  { %v278_v26 = vpop.f32.mrf.mxu0 }
 0x111   :  { %v279_v27 = vadd.f32 %v278_v26, %v1004_v63  ;;  %487 = vmatprep.mubr.f32.mxu1 %v314_v23  ;;  %v315_v30 = vmax.f32 %v277_v25, 0.0 }
 0x112   :  { %v282_v28 = vpop.f32.mrf.mxu0  ;;  %488 = vmatmul.mubr.f32.gmra.mxu1 %v313_v24 }
 0x113   :  { %v316_v29 = vmax.f32 %v279_v27, 0.0  ;;  %v283_v31 = vadd.f32 %v282_v28, %v1002_v62 }
 0x114   :  { %v284_v32 = vpop.f32.mrf.mxu0 }
 0x115   :  { %v285_v33 = vadd.f32 %v284_v32, %v1004_v63  ;;  %492 = vmatprep.mubr.f32.mxu1 %v316_v29  ;;  %v317_v35 = vmax.f32 %v283_v31, 0.0 }
 0x116   :  { %493 = vmatmul.mubr.f32.gmra.mxu1 %v315_v30 }
 0x117   :  { %v318_v34 = vmax.f32 %v285_v33, 0.0 }
 0x119   :  { %497 = vmatprep.mubr.f32.mxu1 %v318_v34 }
 0x11a   :  { %498 = vmatmul.mubr.f32.gmra.mxu1 %v317_v35 }
 0x19e   :  { %v647_v36 = vpop.f32.mrf.mxu1 }
 0x1a0   :  { %v648_v37 = vpop.f32.mrf.mxu1 }
 0x1a1   :  { %v1039_v38 = vadd.f32 %v648_v37, %v647_v36 }
 0x1a2   :  { %v650_v39 = vpop.f32.mrf.mxu1 }
 0x1a4   :  { %v651_v40 = vpop.f32.mrf.mxu1 }
 0x1a5   :  { %v1041_v41 = vadd.f32 %v651_v40, %v650_v39 }
 0x1a6   :  { %v653_v62 = vpop.f32.mrf.mxu1 }
 0x1a8   :  { %v654_v42 = vpop.f32.mrf.mxu1 }
 0x1a9   :  { %v1043_v63 = vadd.f32 %v654_v42, %v653_v62 }
 0x1aa   :  { %v656_v43 = vpop.f32.mrf.mxu1 }
 0x1ac   :  { %v657_v44 = vpop.f32.mrf.mxu1 }
 0x1ad   :  { %v1045_v45 = vadd.f32 %v657_v44, %v656_v43 }
 0x1ae   :  { %v659_v46 = vpop.f32.mrf.mxu1 }
 0x1b0   :  { %v660_v47 = vpop.f32.mrf.mxu1 }
 0x1b1   :  { %v1047_v48 = vadd.f32 %v660_v47, %v659_v46  ;;  %v440_v47 = vadd.f32 %v1045_v45, %v1054_v15  ;;  %v425_v45 = vadd.f32 %v1039_v38, %v1054_v15 }
 0x1b2   :  { %v662_v49 = vpop.f32.mrf.mxu1 }
 0x1b3   :  { %v445_v44 = vadd.f32 %v1047_v48, %v1054_v15  ;;  %v430_v48 = vadd.f32 %v1041_v41, %v1054_v15  ;;  %v521_v41 = vstv %s1108_s6 }
 0x1b4   :  { %v663_v50 = vpop.f32.mrf.mxu1 }
 0x1b5   :  { %v1049_v51 = vadd.f32 %v663_v50, %v662_v49  ;;  %v507_v49 = vmax.f32 %v445_v44, 0.0  ;;  %v435_v50 = vadd.f32 %v1043_v63, %v1054_v15  ;;  %v519_v63 = vld [vmem:[%s1107_s5] sm:$0x1] }
 0x1b6   :  { %v665_v52 = vpop.f32.mrf.mxu1 }
 0x1b7   :  { %v450_v42 = vadd.f32 %v1049_v51, %v1054_v15  ;;  %v506_v51 = vmax.f32 %v440_v47, 0.0 }
 0x1b8   :  { %v666_v53 = vpop.f32.mrf.mxu1 }
 0x1b9   :  { %v667_v54 = vadd.f32 %v666_v53, %v665_v52  ;;  %v508_v46 = vmax.f32 %v450_v42, 0.0  ;;  %v505_v52 = vmax.f32 %v435_v50, 0.0  ;;  %v504_v53 = vmax.f32 %v430_v48, 0.0 }
 0x1ba   :  { %v668_v55 = vpop.f32.mrf.mxu1 }
 0x1bb   :  { %v455_v40 = vadd.f32 %v667_v54, %v1054_v15  ;;  %v503_v54 = vmax.f32 %v425_v45, 0.0 }
 0x1bc   :  { %v669_v56 = vpop.f32.mrf.mxu1 }
 0x1bd   :  { %v670_v57 = vadd.f32 %v669_v56, %v668_v55  ;;  %v509_v43 = vmax.f32 %v455_v40, 0.0 }
 0x1be   :  { %v671_v58 = vpop.f32.mrf.mxu1 }
 0x1bf   :  { %v460_v37 = vadd.f32 %v670_v57, %v1054_v15 }
 0x1c0   :  { %v672_v59 = vpop.f32.mrf.mxu1 }
 0x1c1   :  { %v673_v32 = vadd.f32 %v672_v59, %v671_v58  ;;  %v510_v62 = vmax.f32 %v460_v37, 0.0 }
 0x1c2   :  { %v674_v60 = vpop.f32.mrf.mxu1 }
 0x1c3   :  { %v465_v35 = vadd.f32 %v673_v32, %v1054_v15 }
 0x1c4   :  { %v675_v61 = vpop.f32.mrf.mxu1 }
 0x1c5   :  { %v676_v29 = vadd.f32 %v675_v61, %v674_v60  ;;  %v511_v39 = vmax.f32 %v465_v35, 0.0 }
 0x1c6   :  { %v677_v1 = vpop.f32.mrf.mxu1 }
 0x1c7   :  { %v470_v33 = vadd.f32 %v676_v29, %v1054_v15 }
 0x1c8   :  { %v678_v2 = vpop.f32.mrf.mxu1 }
 0x1c9   :  { %v679_v26 = vadd.f32 %v678_v2, %v677_v1  ;;  %v512_v36 = vmax.f32 %v470_v33, 0.0 }
 0x1ca   :  { %v680_v3 = vpop.f32.mrf.mxu1 }
 0x1cb   :  { %v475_v30 = vadd.f32 %v679_v26, %v1054_v15 }
 0x1cc   :  { %v681_v4 = vpop.f32.mrf.mxu1 }
 0x1cd   :  { %v682_v23 = vadd.f32 %v681_v4, %v680_v3  ;;  %v513_v34 = vmax.f32 %v475_v30, 0.0 }
 0x1ce   :  { %v683_v5 = vpop.f32.mrf.mxu1 }
 0x1cf   :  { %v480_v27 = vadd.f32 %v682_v23, %v1054_v15 }
 0x1d0   :  { %v684_v6 = vpop.f32.mrf.mxu1 }
 0x1d1   :  { %v685_v20 = vadd.f32 %v684_v6, %v683_v5  ;;  %v514_v31 = vmax.f32 %v480_v27, 0.0 }
 0x1d2   :  { %v686_v7 = vpop.f32.mrf.mxu1 }
 0x1d3   :  { %v485_v24 = vadd.f32 %v685_v20, %v1054_v15 }
 0x1d4   :  { %v687_v8 = vpop.f32.mrf.mxu1 }
 0x1d5   :  { %v688_v17 = vadd.f32 %v687_v8, %v686_v7  ;;  %v515_v28 = vmax.f32 %v485_v24, 0.0 }
 0x1d6   :  { %v689_v9 = vpop.f32.mrf.mxu1 }
 0x1d7   :  { %v490_v21 = vadd.f32 %v688_v17, %v1054_v15 }
 0x1d8   :  { %v690_v10 = vpop.f32.mrf.mxu1 }
 0x1d9   :  { %v691_v13 = vadd.f32 %v690_v10, %v689_v9  ;;  %v516_v25 = vmax.f32 %v490_v21, 0.0 }
 0x1da   :  { %v692_v11 = vpop.f32.mrf.mxu1 }
 0x1db   :  { %v495_v18 = vadd.f32 %v691_v13, %v1054_v15 }
 0x1dc   :  { %v693_v12 = vpop.f32.mrf.mxu1 }
 0x1dd   :  { %v694_v14 = vadd.f32 %v693_v12, %v692_v11  ;;  %v517_v22 = vmax.f32 %v495_v18, 0.0 }
 0x1df   :  { %v500_v16 = vadd.f32 %v694_v14, %v1054_v15 }
 0x1e1   :  { %v518_v19 = vmax.f32 %v500_v16, 0.0 }
 0x1e3   :  { %713 = vmatpush3.xpose.msra.mxu0 %v518_v19 }
 0x1e4   :  { %714 = vmatprep.subr.mxu0 %v777_v0 }
 0x1e7   :  { %715 = vmatpush3.xpose.msra.mxu0 %v517_v22 }
 0x1e8   :  { %716 = vmatprep.subr.mxu0 %v777_v0 }
 0x1eb   :  { %717 = vmatpush3.xpose.msra.mxu0 %v516_v25 }
 0x1ec   :  { %718 = vmatprep.subr.mxu0 %v777_v0 }
 0x1ef   :  { %719 = vmatpush3.xpose.msra.mxu0 %v515_v28 }
 0x1f0   :  { %720 = vmatprep.subr.mxu0 %v777_v0 }
 0x1f3   :  { %721 = vmatpush3.xpose.msra.mxu0 %v514_v31 }
 0x1f4   :  { %722 = vmatprep.subr.mxu0 %v777_v0 }
 0x1f7   :  { %723 = vmatpush3.xpose.msra.mxu0 %v513_v34 }
 0x1f8   :  { %724 = vmatprep.subr.mxu0 %v777_v0 }
 0x1fb   :  { %725 = vmatpush3.xpose.msra.mxu0 %v512_v36 }
 0x1fc   :  { %726 = vmatprep.subr.mxu0 %v777_v0 }
 0x1ff   :  { %727 = vmatpush3.xpose.msra.mxu0 %v511_v39 }
 0x200   :  { %728 = vmatprep.subr.mxu0 %v777_v0 }
 0x203   :  { %729 = vmatpush3.xpose.msra.mxu0 %v510_v62 }
 0x204   :  { %730 = vmatprep.subr.mxu0 %v777_v0 }
 0x207   :  { %731 = vmatpush3.xpose.msra.mxu0 %v509_v43 }
 0x208   :  { %732 = vmatprep.subr.mxu0 %v777_v0 }
 0x20b   :  { %733 = vmatpush3.xpose.msra.mxu0 %v508_v46 }
 0x20c   :  { %734 = vmatprep.subr.mxu0 %v777_v0 }
 0x20f   :  { %735 = vmatpush3.xpose.msra.mxu0 %v507_v49 }
 0x210   :  { %736 = vmatprep.subr.mxu0 %v777_v0 }
 0x213   :  { %737 = vmatpush3.xpose.msra.mxu0 %v506_v51 }
 0x214   :  { %738 = vmatprep.subr.mxu0 %v777_v0 }
 0x217   :  { %739 = vmatpush3.xpose.msra.mxu0 %v505_v52 }
 0x218   :  { %740 = vmatprep.subr.mxu0 %v777_v0 }
 0x21b   :  { %741 = vmatpush3.xpose.msra.mxu0 %v504_v53 }
 0x21c   :  { %742 = vmatprep.subr.mxu0 %v777_v0 }
 0x21f   :  { %743 = vmatpush3.xpose.msra.mxu0 %v503_v54 }
 0x222   :  { %745 = vmatmul.mubr.f32.vlgmr.msra.gmra.mxu0 %v519_v63 }
 0x2e2   :  { %v588_v55 = vpop.f32.mrf.mxu0 }
 0x2e3   :  { %v589_v56 = vadd.f32 %v588_v55, %v521_v41 }
 0x2e4   :  { %v746_v57 = vpop.f32.mrf.mxu0 }
 0x2e5   :  { %592 = vst [vmem:[%s1109_s7] sm:$0x1] %v589_v56 }
 0x2e6   :  { %597 = vsyncpa [#allocation4], 1 }

</bundles_post_ra>
